<compile_context>
chip_gen: v6e
topology: v6e:2x2x1
jax: 0.10.0
libtpu: 0.0.40
codegen_flags: <defaults>
</compile_context>

<pallas_src>
import functools

import jax
import jax.numpy as jnp
from jax import lax
from jax.experimental import pallas as pl
from jax.experimental.pallas import tpu as pltpu

_LANES = 128
_SUBLANES = 8                      # f32-native sublane count (inputs are f32)
_GRP = _SUBLANES * _LANES          # 1024 elements per (8, 128) vreg group

# Block-size caps (1 group = 4 KiB f32).  streams x 2 double-buffers x block
# plus compiler temporaries stays well under the explicit 32 MiB VMEM limit on
# every generation (v5e/v6e: 128 MiB physical, v7x: 64 MiB physical).
_STATS_TILE_GRPS = 512             # 2 MiB/block, 2 input streams  ->  8 MiB of block buffers
_NORM_TILE_GRPS = 256              # 1 MiB/block, 2 in + 2 out     ->  8 MiB of block buffers
_VMEM_LIMIT_BYTES = 32 * 1024 * 1024


def _cdiv(a, b):
    return -(-a // b)


def _to_vreg_groups(a):
    """View the tensor as (groups, 8, 128) vreg groups in its native dtype.

    When a.size % 1024 == 0 this is a metadata-only reshape (no HBM copy).
    Otherwise we fall back to a zero-pad of the ragged tail (one extra pass);
    the pad region is masked inside the stats kernel and sliced off after the
    normalize kernel.
    """
    flat = a.reshape(-1)
    n = flat.shape[0]
    grps = max(1, _cdiv(n, _GRP))
    if grps * _GRP != n:
        # TODO(synk): ragged fallback copies the flattened tensor once.
        flat = jnp.pad(flat, (0, grps * _GRP - n))
    return flat.reshape(grps, _SUBLANES, _LANES), n


# ---------------------------------------------------------------------------
# Kernel 1: fused min/max/SSE reduction (packed accumulator output)
# ---------------------------------------------------------------------------
def _stats_kernel(rx_ref, x_ref, acc_ref, *, n_valid, tile_grps, mask_last):
    c = pl.program_id(0)                 # optional core-split axis ("parallel")
    i = pl.program_id(1)                 # reduction axis ("arbitrary")
    n_split = pl.num_programs(0)
    steps = pl.num_programs(1)

    @pl.when(i == 0)
    def _init():
        inf = jnp.full((_SUBLANES, _LANES), jnp.inf, jnp.float32)
        acc_ref[0, 0] = inf                                    # min(rx)
        acc_ref[0, 1] = -inf                                   # max(rx)
        acc_ref[0, 2] = inf                                    # min(x)
        acc_ref[0, 3] = -inf                                   # max(x)
        acc_ref[0, 4] = jnp.zeros((_SUBLANES, _LANES), jnp.float32)  # sse

    rx = rx_ref[...].astype(jnp.float32)          # (tile_grps, 8, 128)
    xx = x_ref[...].astype(jnp.float32)

    def accum(valid):
        if valid is None:                          # fast path: no selects
            rx_lo, rx_hi, x_lo, x_hi = rx, rx, xx, xx
            diff = rx - xx
        else:
            rx_lo = jnp.where(valid, rx, jnp.inf)
            rx_hi = jnp.where(valid, rx, -jnp.inf)
            x_lo = jnp.where(valid, xx, jnp.inf)
            x_hi = jnp.where(valid, xx, -jnp.inf)
            diff = jnp.where(valid, rx - xx, 0.0)
        acc_ref[0, 0] = jnp.minimum(acc_ref[0, 0], rx_lo.min(axis=0))
        acc_ref[0, 1] = jnp.maximum(acc_ref[0, 1], rx_hi.max(axis=0))
        acc_ref[0, 2] = jnp.minimum(acc_ref[0, 2], x_lo.min(axis=0))
        acc_ref[0, 3] = jnp.maximum(acc_ref[0, 3], x_hi.max(axis=0))
        acc_ref[0, 4] = acc_ref[0, 4] + (diff * diff).sum(axis=0)

    if not mask_last:
        # Every block is fully valid: pure VPU min/max/mul-add, no iota/where.
        accum(None)
    else:
        is_last = jnp.logical_and(c == n_split - 1, i == steps - 1)

        @pl.when(jnp.logical_not(is_last))
        def _fast():
            accum(None)

        @pl.when(is_last)
        def _masked():
            # Only the single last block ever pays for masking (ragged pad tail
            # and/or the out-of-bounds rows of a partial last block).
            shape = (tile_grps, _SUBLANES, _LANES)
            g = lax.broadcasted_iota(jnp.int32, shape, 0)
            s = lax.broadcasted_iota(jnp.int32, shape, 1)
            l = lax.broadcasted_iota(jnp.int32, shape, 2)
            base_grp = (c * steps + i) * tile_grps
            flat_idx = (base_grp + g) * _GRP + s * _LANES + l
            accum(flat_idx < n_valid)


def _compute_stats(rx3, x3, *, n_elems, tile_grps, n_split, steps, mask_last):
    kernel = functools.partial(_stats_kernel, n_valid=n_elems,
                               tile_grps=tile_grps, mask_last=mask_last)

    data_spec = pl.BlockSpec((tile_grps, _SUBLANES, _LANES),
                             lambda c, i: (c * steps + i, 0, 0))
    acc_spec = pl.BlockSpec((1, 5, _SUBLANES, _LANES),
                            lambda c, i: (c, 0, 0, 0))

    bytes_accessed = ((rx3.size + x3.size) * rx3.dtype.itemsize
                      + n_split * 5 * _GRP * 4)
    cost = pl.CostEstimate(flops=9 * n_elems, transcendentals=0,
                           bytes_accessed=int(bytes_accessed))

    return pl.pallas_call(
        kernel,
        grid=(n_split, steps),
        in_specs=[data_spec, data_spec],
        out_specs=acc_spec,
        out_shape=jax.ShapeDtypeStruct((n_split, 5, _SUBLANES, _LANES),
                                       jnp.float32),
        compiler_params=pltpu.CompilerParams(
            dimension_semantics=("parallel", "arbitrary"),
            vmem_limit_bytes=_VMEM_LIMIT_BYTES),
        cost_estimate=cost,
    )(rx3, x3)


# ---------------------------------------------------------------------------
# Kernel 2: elementwise [0, 1] normalization of both tensors
# ---------------------------------------------------------------------------
def _normalize_kernel(stats_ref, rx_ref, x_ref, rx_out_ref, x_out_ref):
    rx = rx_ref[...].astype(jnp.float32)
    xx = x_ref[...].astype(jnp.float32)
    rx_out_ref[...] = ((rx - stats_ref[0]) * stats_ref[1]).astype(rx_out_ref.dtype)
    x_out_ref[...] = ((xx - stats_ref[2]) * stats_ref[3]).astype(x_out_ref.dtype)


def _normalize_pair(stats_vec, rx3, x3, *, tile_grps, blocks_total):
    data_spec = pl.BlockSpec((tile_grps, _SUBLANES, _LANES),
                             lambda i: (i, 0, 0))
    return pl.pallas_call(
        _normalize_kernel,
        grid=(blocks_total,),
        in_specs=[pl.BlockSpec(memory_space=pltpu.MemorySpace.SMEM),
                  data_spec, data_spec],
        out_specs=[data_spec, data_spec],
        out_shape=[jax.ShapeDtypeStruct(rx3.shape, rx3.dtype),
                   jax.ShapeDtypeStruct(x3.shape, x3.dtype)],
        compiler_params=pltpu.CompilerParams(
            dimension_semantics=("parallel",),
            vmem_limit_bytes=_VMEM_LIMIT_BYTES),
    )(stats_vec, rx3, x3)


# ---------------------------------------------------------------------------
# Wrapper: full forward pass
# ---------------------------------------------------------------------------
def soil_evaporation_vae_loss(reconstructed_x, x, mu, logvar, lpips_fn, *,
                              data_length, batch_size, max_tile_grps=None):
    """Pallas TPU forward pass of SoilEvaporationVAELoss (returns a scalar)."""
    loss_weight = float(data_length) / float(batch_size)

    rx3, n_elems = _to_vreg_groups(reconstructed_x)
    x3, _ = _to_vreg_groups(x)
    assert n_elems < 2 ** 31, "in-kernel flat index is int32"

    grps = rx3.shape[0]
    aligned = (grps * _GRP == n_elems)          # no ragged tail / no pad

    # -------- fused stats reduction --------
    stats_tile = min(_STATS_TILE_GRPS if max_tile_grps is None else max_tile_grps,
                     grps)
    stats_blocks = _cdiv(grps, stats_tile)
    # 2-way split only when it keeps the grid exact (v7x two-TC sharding via
    # "parallel"; on single-TC chips it is just a second tiny accumulator slot).
    n_split = 2 if stats_blocks % 2 == 0 else 1
    steps = stats_blocks // n_split
    mask_last = (not aligned) or (stats_blocks * stats_tile != grps)

    acc = _compute_stats(rx3, x3, n_elems=n_elems, tile_grps=stats_tile,
                         n_split=n_split, steps=steps, mask_last=mask_last)
    min_rx = jnp.min(acc[:, 0])
    max_rx = jnp.max(acc[:, 1])
    min_x = jnp.min(acc[:, 2])
    max_x = jnp.max(acc[:, 3])
    mse_loss = jnp.sum(acc[:, 4]) / n_elems

    stats_vec = jnp.stack([min_rx, 1.0 / (max_rx - min_rx + 1e-6),
                           min_x, 1.0 / (max_x - min_x + 1e-6)]
                          ).astype(jnp.float32)

    # -------- elementwise normalize --------
    norm_tile = min(_NORM_TILE_GRPS if max_tile_grps is None else max_tile_grps,
                    grps)
    norm_blocks = _cdiv(grps, norm_tile)
    rx_n3, x_n3 = _normalize_pair(stats_vec, rx3, x3, tile_grps=norm_tile,
                                  blocks_total=norm_blocks)
    if aligned:
        rx_norm = rx_n3.reshape(reconstructed_x.shape)   # metadata-only
        x_norm = x_n3.reshape(x.shape)
    else:
        rx_norm = rx_n3.reshape(-1)[:n_elems].reshape(reconstructed_x.shape)
        x_norm = x_n3.reshape(-1)[:n_elems].reshape(x.shape)

    # Channel repeat + external LPIPS network stay outside the kernels.
    # TODO(synk): `lpips` is an external pretrained perceptual network handed in
    # by the caller (exactly like the PyTorch forward() argument); it is not
    # translated to Pallas here.
    recon_rep = jnp.tile(rx_norm, (1, 3, 1, 1))
    x_rep = jnp.tile(x_norm, (1, 3, 1, 1))
    lpips_loss = lpips_fn(recon_rep, x_rep)

    # KL on the tiny (B, z_dim) latents: plain JAX (cheaper than an extra
    # kernel pipeline and matches the reference exactly).
    kl_div = -0.5 * jnp.sum(1.0 + logvar - jnp.square(mu) - jnp.exp(logvar))

    return kl_div + (lpips_loss * 0.3 + mse_loss * 0.5) * loss_weight


# ---------------------------------------------------------------------------
# Pure-JAX reference for the self-check
# ---------------------------------------------------------------------------
def _reference(reconstructed_x, x, mu, logvar, lpips_fn, *, data_length,
               batch_size):
    def norm01(t):
        return (t - jnp.min(t)) / (jnp.max(t) - jnp.min(t) + 1e-6)

    w = data_length / batch_size
    recon_rep = jnp.tile(norm01(reconstructed_x), (1, 3, 1, 1))
    x_rep = jnp.tile(norm01(x), (1, 3, 1, 1))
    mse = jnp.mean((reconstructed_x - x) ** 2)
    lp = lpips_fn(recon_rep, x_rep)
    kl = -0.5 * jnp.sum(1.0 + logvar - mu ** 2 - jnp.exp(logvar))
    return kl + (lp * 0.3 + mse * 0.5) * w


if __name__ == "__main__":
    def _surrogate_lpips(a, b):
        # Deterministic stand-in for the external LPIPS network argument.
        return jnp.mean(jnp.abs(a - b))

    key = jax.random.PRNGKey(0)
    data_length = 100
    z_dim = 32

    # (shape, max_tile_grps):
    #  - aligned single block (default tile)
    #  - aligned, 8 blocks -> exact 2-way core split, pure fast path
    #  - aligned, partial last block -> masked path on the last block only
    #  - ragged size -> pad fallback + element mask on the last block only
    cases = [
        ((2, 1, 32, 32), None),
        ((2, 4, 64, 64), 4),
        ((2, 4, 64, 64), 3),
        ((2, 3, 210, 210), 4),
    ]
    for shape, tile in cases:
        key, k1, k2, k3, k4 = jax.random.split(key, 5)
        b = shape[0]
        x = jax.random.normal(k1, shape, dtype=jnp.float32)
        rx = jax.random.normal(k2, shape, dtype=jnp.float32)
        mu = 0.1 * jax.random.normal(k3, (b, z_dim), dtype=jnp.float32)
        logvar = 0.1 * jax.random.normal(k4, (b, z_dim), dtype=jnp.float32)

        loss_fn = jax.jit(functools.partial(
            soil_evaporation_vae_loss, lpips_fn=_surrogate_lpips,
            data_length=data_length, batch_size=b, max_tile_grps=tile))
        loss = jax.block_until_ready(loss_fn(rx, x, mu, logvar))

        ref = _reference(rx, x, mu, logvar, _surrogate_lpips,
                         data_length=data_length, batch_size=b)
        assert jnp.allclose(loss, ref, rtol=1e-4, atol=1e-4), (shape, tile, loss, ref)

    print("KERNEL_OK")
</pallas_src>

<mosaic_0001>
module attributes {stable_mosaic.version = 11 : i64} {
  func.func @_stats_kernel(%arg0: i32, %arg1: i32, %arg2: memref<2x8x128xf32, #tpu.memory_space<vmem>>, %arg3: memref<2x8x128xf32, #tpu.memory_space<vmem>>, %arg4: memref<1x5x8x128xf32, #tpu.memory_space<vmem>>) attributes {dimension_semantics = [#tpu.dimension_semantics<parallel>, #tpu.dimension_semantics<arbitrary>], iteration_bounds = array<i64: 1, 1>, scalar_prefetch = 0 : i64, scratch_operands = 0 : i64, tpu.core_type = #tpu.core_type<tc>, window_params = [{transform_indices = @transform_0, window_bounds = array<i64: 2, 8, 128>}, {transform_indices = @transform_1, window_bounds = array<i64: 2, 8, 128>}, {transform_indices = @transform_2, window_bounds = array<i64: 1, 5, 8, 128>}]} {
    %c0_i32 = arith.constant 0 : i32
    %0 = arith.cmpi eq, %arg1, %c0_i32 : i32
    %1 = arith.extui %0 : i1 to i32
    %c0_i32_0 = arith.constant 0 : i32
    %2 = arith.cmpi ne, %1, %c0_i32_0 : i32
    scf.if %2 {
      %cst_46 = arith.constant 0x7F800000 : f32
      %42 = vector.broadcast %cst_46 : f32 to vector<8x128xf32>
      %c0_47 = arith.constant 0 : index
      %c0_48 = arith.constant 0 : index
      %c0_49 = arith.constant 0 : index
      %c0_50 = arith.constant 0 : index
      %43 = vector.load %arg4[%c0_47, %c0_48, %c0_49, %c0_50] : memref<1x5x8x128xf32, #tpu.memory_space<vmem>>, vector<1x1x8x128xf32>
      %44 = vector.shape_cast %43 : vector<1x1x8x128xf32> to vector<8x128xf32>
      %45 = vector.shape_cast %42 : vector<8x128xf32> to vector<1x1x8x128xf32>
      tpu.vector_store %arg4[%c0_47, %c0_48, %c0_49, %c0_50], %45 {strides = array<i32>} : memref<1x5x8x128xf32, #tpu.memory_space<vmem>>, vector<1x1x8x128xf32>,
      %cst_51 = arith.constant 0.000000e+00 : f32
      %46 = vector.broadcast %cst_51 : f32 to vector<8x128xf32>
      %47 = arith.subf %46, %42 : vector<8x128xf32>
      %c0_52 = arith.constant 0 : index
      %c1_53 = arith.constant 1 : index
      %c0_54 = arith.constant 0 : index
      %c0_55 = arith.constant 0 : index
      %48 = vector.load %arg4[%c0_52, %c1_53, %c0_54, %c0_55] : memref<1x5x8x128xf32, #tpu.memory_space<vmem>>, vector<1x1x8x128xf32>
      %49 = vector.shape_cast %48 : vector<1x1x8x128xf32> to vector<8x128xf32>
      %50 = vector.shape_cast %47 : vector<8x128xf32> to vector<1x1x8x128xf32>
      tpu.vector_store %arg4[%c0_52, %c1_53, %c0_54, %c0_55], %50 {strides = array<i32>} : memref<1x5x8x128xf32, #tpu.memory_space<vmem>>, vector<1x1x8x128xf32>,
      %c0_56 = arith.constant 0 : index
      %c2_57 = arith.constant 2 : index
      %c0_58 = arith.constant 0 : index
      %c0_59 = arith.constant 0 : index
      %51 = vector.load %arg4[%c0_56, %c2_57, %c0_58, %c0_59] : memref<1x5x8x128xf32, #tpu.memory_space<vmem>>, vector<1x1x8x128xf32>
      %52 = vector.shape_cast %51 : vector<1x1x8x128xf32> to vector<8x128xf32>
      %53 = vector.shape_cast %42 : vector<8x128xf32> to vector<1x1x8x128xf32>
      tpu.vector_store %arg4[%c0_56, %c2_57, %c0_58, %c0_59], %53 {strides = array<i32>} : memref<1x5x8x128xf32, #tpu.memory_space<vmem>>, vector<1x1x8x128xf32>,
      %cst_60 = arith.constant 0.000000e+00 : f32
      %54 = vector.broadcast %cst_60 : f32 to vector<8x128xf32>
      %55 = arith.subf %54, %42 : vector<8x128xf32>
      %c0_61 = arith.constant 0 : index
      %c3_62 = arith.constant 3 : index
      %c0_63 = arith.constant 0 : index
      %c0_64 = arith.constant 0 : index
      %56 = vector.load %arg4[%c0_61, %c3_62, %c0_63, %c0_64] : memref<1x5x8x128xf32, #tpu.memory_space<vmem>>, vector<1x1x8x128xf32>
      %57 = vector.shape_cast %56 : vector<1x1x8x128xf32> to vector<8x128xf32>
      %58 = vector.shape_cast %55 : vector<8x128xf32> to vector<1x1x8x128xf32>
      tpu.vector_store %arg4[%c0_61, %c3_62, %c0_63, %c0_64], %58 {strides = array<i32>} : memref<1x5x8x128xf32, #tpu.memory_space<vmem>>, vector<1x1x8x128xf32>,
      %cst_65 = arith.constant 0.000000e+00 : f32
      %59 = vector.broadcast %cst_65 : f32 to vector<8x128xf32>
      %c0_66 = arith.constant 0 : index
      %c4_67 = arith.constant 4 : index
      %c0_68 = arith.constant 0 : index
      %c0_69 = arith.constant 0 : index
      %60 = vector.load %arg4[%c0_66, %c4_67, %c0_68, %c0_69] : memref<1x5x8x128xf32, #tpu.memory_space<vmem>>, vector<1x1x8x128xf32>
      %61 = vector.shape_cast %60 : vector<1x1x8x128xf32> to vector<8x128xf32>
      %62 = vector.shape_cast %59 : vector<8x128xf32> to vector<1x1x8x128xf32>
      tpu.vector_store %arg4[%c0_66, %c4_67, %c0_68, %c0_69], %62 {strides = array<i32>} : memref<1x5x8x128xf32, #tpu.memory_space<vmem>>, vector<1x1x8x128xf32>,
    } else {
    }
    %c0 = arith.constant 0 : index
    %c0_1 = arith.constant 0 : index
    %c0_2 = arith.constant 0 : index
    %3 = vector.load %arg2[%c0, %c0_1, %c0_2] : memref<2x8x128xf32, #tpu.memory_space<vmem>>, vector<2x8x128xf32>
    %c0_3 = arith.constant 0 : index
    %c0_4 = arith.constant 0 : index
    %c0_5 = arith.constant 0 : index
    %4 = vector.load %arg3[%c0_3, %c0_4, %c0_5] : memref<2x8x128xf32, #tpu.memory_space<vmem>>, vector<2x8x128xf32>
    %5 = arith.subf %3, %4 : vector<2x8x128xf32>
    %c0_6 = arith.constant 0 : index
    %c0_7 = arith.constant 0 : index
    %c0_8 = arith.constant 0 : index
    %c0_9 = arith.constant 0 : index
    %6 = vector.load %arg4[%c0_6, %c0_7, %c0_8, %c0_9] : memref<1x5x8x128xf32, #tpu.memory_space<vmem>>, vector<1x1x8x128xf32>
    %7 = vector.shape_cast %6 : vector<1x1x8x128xf32> to vector<8x128xf32>
    %cst = arith.constant dense<0x7F800000> : vector<8x128xf32>
    %8 = vector.multi_reduction <minimumf>, %3, %cst [0] : vector<2x8x128xf32> to vector<8x128xf32>
    %9 = arith.minimumf %7, %8 : vector<8x128xf32>
    %c0_10 = arith.constant 0 : index
    %c0_11 = arith.constant 0 : index
    %c0_12 = arith.constant 0 : index
    %c0_13 = arith.constant 0 : index
    %10 = vector.load %arg4[%c0_10, %c0_11, %c0_12, %c0_13] : memref<1x5x8x128xf32, #tpu.memory_space<vmem>>, vector<1x1x8x128xf32>
    %11 = vector.shape_cast %10 : vector<1x1x8x128xf32> to vector<8x128xf32>
    %12 = vector.shape_cast %9 : vector<8x128xf32> to vector<1x1x8x128xf32>
    tpu.vector_store %arg4[%c0_10, %c0_11, %c0_12, %c0_13], %12 {strides = array<i32>} : memref<1x5x8x128xf32, #tpu.memory_space<vmem>>, vector<1x1x8x128xf32>,
    %c0_14 = arith.constant 0 : index
    %c1 = arith.constant 1 : index
    %c0_15 = arith.constant 0 : index
    %c0_16 = arith.constant 0 : index
    %13 = vector.load %arg4[%c0_14, %c1, %c0_15, %c0_16] : memref<1x5x8x128xf32, #tpu.memory_space<vmem>>, vector<1x1x8x128xf32>
    %14 = vector.shape_cast %13 : vector<1x1x8x128xf32> to vector<8x128xf32>
    %cst_17 = arith.constant dense<0xFF800000> : vector<8x128xf32>
    %15 = vector.multi_reduction <maximumf>, %3, %cst_17 [0] : vector<2x8x128xf32> to vector<8x128xf32>
    %16 = arith.maximumf %14, %15 : vector<8x128xf32>
    %c0_18 = arith.constant 0 : index
    %c1_19 = arith.constant 1 : index
    %c0_20 = arith.constant 0 : index
    %c0_21 = arith.constant 0 : index
    %17 = vector.load %arg4[%c0_18, %c1_19, %c0_20, %c0_21] : memref<1x5x8x128xf32, #tpu.memory_space<vmem>>, vector<1x1x8x128xf32>
    %18 = vector.shape_cast %17 : vector<1x1x8x128xf32> to vector<8x128xf32>
    %19 = vector.shape_cast %16 : vector<8x128xf32> to vector<1x1x8x128xf32>
    tpu.vector_store %arg4[%c0_18, %c1_19, %c0_20, %c0_21], %19 {strides = array<i32>} : memref<1x5x8x128xf32, #tpu.memory_space<vmem>>, vector<1x1x8x128xf32>,
    %c0_22 = arith.constant 0 : index
    %c2 = arith.constant 2 : index
    %c0_23 = arith.constant 0 : index
    %c0_24 = arith.constant 0 : index
    %20 = vector.load %arg4[%c0_22, %c2, %c0_23, %c0_24] : memref<1x5x8x128xf32, #tpu.memory_space<vmem>>, vector<1x1x8x128xf32>
    %21 = vector.shape_cast %20 : vector<1x1x8x128xf32> to vector<8x128xf32>
    %cst_25 = arith.constant dense<0x7F800000> : vector<8x128xf32>
    %22 = vector.multi_reduction <minimumf>, %4, %cst_25 [0] : vector<2x8x128xf32> to vector<8x128xf32>
    %23 = arith.minimumf %21, %22 : vector<8x128xf32>
    %c0_26 = arith.constant 0 : index
    %c2_27 = arith.constant 2 : index
    %c0_28 = arith.constant 0 : index
    %c0_29 = arith.constant 0 : index
    %24 = vector.load %arg4[%c0_26, %c2_27, %c0_28, %c0_29] : memref<1x5x8x128xf32, #tpu.memory_space<vmem>>, vector<1x1x8x128xf32>
    %25 = vector.shape_cast %24 : vector<1x1x8x128xf32> to vector<8x128xf32>
    %26 = vector.shape_cast %23 : vector<8x128xf32> to vector<1x1x8x128xf32>
    tpu.vector_store %arg4[%c0_26, %c2_27, %c0_28, %c0_29], %26 {strides = array<i32>} : memref<1x5x8x128xf32, #tpu.memory_space<vmem>>, vector<1x1x8x128xf32>,
    %c0_30 = arith.constant 0 : index
    %c3 = arith.constant 3 : index
    %c0_31 = arith.constant 0 : index
    %c0_32 = arith.constant 0 : index
    %27 = vector.load %arg4[%c0_30, %c3, %c0_31, %c0_32] : memref<1x5x8x128xf32, #tpu.memory_space<vmem>>, vector<1x1x8x128xf32>
    %28 = vector.shape_cast %27 : vector<1x1x8x128xf32> to vector<8x128xf32>
    %cst_33 = arith.constant dense<0xFF800000> : vector<8x128xf32>
    %29 = vector.multi_reduction <maximumf>, %4, %cst_33 [0] : vector<2x8x128xf32> to vector<8x128xf32>
    %30 = arith.maximumf %28, %29 : vector<8x128xf32>
    %c0_34 = arith.constant 0 : index
    %c3_35 = arith.constant 3 : index
    %c0_36 = arith.constant 0 : index
    %c0_37 = arith.constant 0 : index
    %31 = vector.load %arg4[%c0_34, %c3_35, %c0_36, %c0_37] : memref<1x5x8x128xf32, #tpu.memory_space<vmem>>, vector<1x1x8x128xf32>
    %32 = vector.shape_cast %31 : vector<1x1x8x128xf32> to vector<8x128xf32>
    %33 = vector.shape_cast %30 : vector<8x128xf32> to vector<1x1x8x128xf32>
    tpu.vector_store %arg4[%c0_34, %c3_35, %c0_36, %c0_37], %33 {strides = array<i32>} : memref<1x5x8x128xf32, #tpu.memory_space<vmem>>, vector<1x1x8x128xf32>,
    %c0_38 = arith.constant 0 : index
    %c4 = arith.constant 4 : index
    %c0_39 = arith.constant 0 : index
    %c0_40 = arith.constant 0 : index
    %34 = vector.load %arg4[%c0_38, %c4, %c0_39, %c0_40] : memref<1x5x8x128xf32, #tpu.memory_space<vmem>>, vector<1x1x8x128xf32>
    %35 = vector.shape_cast %34 : vector<1x1x8x128xf32> to vector<8x128xf32>
    %36 = arith.mulf %5, %5 : vector<2x8x128xf32>
    %cst_41 = arith.constant dense<0.000000e+00> : vector<8x128xf32>
    %37 = vector.multi_reduction <add>, %36, %cst_41 [0] : vector<2x8x128xf32> to vector<8x128xf32>
    %38 = arith.addf %35, %37 : vector<8x128xf32>
    %c0_42 = arith.constant 0 : index
    %c4_43 = arith.constant 4 : index
    %c0_44 = arith.constant 0 : index
    %c0_45 = arith.constant 0 : index
    %39 = vector.load %arg4[%c0_42, %c4_43, %c0_44, %c0_45] : memref<1x5x8x128xf32, #tpu.memory_space<vmem>>, vector<1x1x8x128xf32>
    %40 = vector.shape_cast %39 : vector<1x1x8x128xf32> to vector<8x128xf32>
    %41 = vector.shape_cast %38 : vector<8x128xf32> to vector<1x1x8x128xf32>
    tpu.vector_store %arg4[%c0_42, %c4_43, %c0_44, %c0_45], %41 {strides = array<i32>} : memref<1x5x8x128xf32, #tpu.memory_space<vmem>>, vector<1x1x8x128xf32>,
    return
  }
  func.func @transform_0(%arg0: i32, %arg1: i32) -> (i32, i32, i32) {
    %c1_i32 = arith.constant 1 : i32
    %0 = arith.muli %arg0, %c1_i32 : i32
    %1 = arith.addi %0, %arg1 : i32
    %c0_i32 = arith.constant 0 : i32
    %c0_i32_0 = arith.constant 0 : i32
    %c0_i32_1 = arith.constant 0 : i32
    return %1, %c0_i32, %c0_i32_0 : i32, i32, i32
  }
  func.func @transform_1(%arg0: i32, %arg1: i32) -> (i32, i32, i32) {
    %c1_i32 = arith.constant 1 : i32
    %0 = arith.muli %arg0, %c1_i32 : i32
    %1 = arith.addi %0, %arg1 : i32
    %c0_i32 = arith.constant 0 : i32
    %c0_i32_0 = arith.constant 0 : i32
    %c0_i32_1 = arith.constant 0 : i32
    return %1, %c0_i32, %c0_i32_0 : i32, i32, i32
  }
  func.func @transform_2(%arg0: i32, %arg1: i32) -> (i32, i32, i32, i32) {
    %c0_i32 = arith.constant 0 : i32
    %c0_i32_0 = arith.constant 0 : i32
    %c0_i32_1 = arith.constant 0 : i32
    %c0_i32_2 = arith.constant 0 : i32
    return %arg0, %c0_i32, %c0_i32_0, %c0_i32_1 : i32, i32, i32, i32
  }
}

module attributes {stable_mosaic.version = 11 : i64} {
  func.func @_normalize_kernel(%arg0: i32, %arg1: memref<4xf32, #tpu.memory_space<smem>>, %arg2: memref<2x8x128xf32, #tpu.memory_space<vmem>>, %arg3: memref<2x8x128xf32, #tpu.memory_space<vmem>>, %arg4: memref<2x8x128xf32, #tpu.memory_space<vmem>>, %arg5: memref<2x8x128xf32, #tpu.memory_space<vmem>>) attributes {dimension_semantics = [#tpu.dimension_semantics<parallel>], iteration_bounds = array<i64: 1>, scalar_prefetch = 0 : i64, scratch_operands = 0 : i64, tpu.core_type = #tpu.core_type<tc>, window_params = [{transform_indices = @transform_0, window_bounds = array<i64: 4>}, {transform_indices = @transform_1, window_bounds = array<i64: 2, 8, 128>}, {transform_indices = @transform_2, window_bounds = array<i64: 2, 8, 128>}, {transform_indices = @transform_3, window_bounds = array<i64: 2, 8, 128>}, {transform_indices = @transform_4, window_bounds = array<i64: 2, 8, 128>}]} {
    %c0 = arith.constant 0 : index
    %c0_0 = arith.constant 0 : index
    %c0_1 = arith.constant 0 : index
    %0 = vector.load %arg2[%c0, %c0_0, %c0_1] : memref<2x8x128xf32, #tpu.memory_space<vmem>>, vector<2x8x128xf32>
    %c0_2 = arith.constant 0 : index
    %c0_3 = arith.constant 0 : index
    %c0_4 = arith.constant 0 : index
    %1 = vector.load %arg3[%c0_2, %c0_3, %c0_4] : memref<2x8x128xf32, #tpu.memory_space<vmem>>, vector<2x8x128xf32>
    %c0_5 = arith.constant 0 : index
    %2 = memref.load %arg1[%c0_5] : memref<4xf32, #tpu.memory_space<smem>>
    %3 = vector.broadcast %2 : f32 to vector<2x8x128xf32>
    %4 = arith.subf %0, %3 : vector<2x8x128xf32>
    %c1 = arith.constant 1 : index
    %5 = memref.load %arg1[%c1] : memref<4xf32, #tpu.memory_space<smem>>
    %6 = vector.broadcast %5 : f32 to vector<2x8x128xf32>
    %7 = arith.mulf %4, %6 : vector<2x8x128xf32>
    %c0_6 = arith.constant 0 : index
    %c0_7 = arith.constant 0 : index
    %c0_8 = arith.constant 0 : index
    %8 = vector.load %arg4[%c0_6, %c0_7, %c0_8] : memref<2x8x128xf32, #tpu.memory_space<vmem>>, vector<2x8x128xf32>
    tpu.vector_store %arg4[%c0_6, %c0_7, %c0_8], %7 {strides = array<i32>} : memref<2x8x128xf32, #tpu.memory_space<vmem>>, vector<2x8x128xf32>,
    %c2 = arith.constant 2 : index
    %9 = memref.load %arg1[%c2] : memref<4xf32, #tpu.memory_space<smem>>
    %10 = vector.broadcast %9 : f32 to vector<2x8x128xf32>
    %11 = arith.subf %1, %10 : vector<2x8x128xf32>
    %c3 = arith.constant 3 : index
    %12 = memref.load %arg1[%c3] : memref<4xf32, #tpu.memory_space<smem>>
    %13 = vector.broadcast %12 : f32 to vector<2x8x128xf32>
    %14 = arith.mulf %11, %13 : vector<2x8x128xf32>
    %c0_9 = arith.constant 0 : index
    %c0_10 = arith.constant 0 : index
    %c0_11 = arith.constant 0 : index
    %15 = vector.load %arg5[%c0_9, %c0_10, %c0_11] : memref<2x8x128xf32, #tpu.memory_space<vmem>>, vector<2x8x128xf32>
    tpu.vector_store %arg5[%c0_9, %c0_10, %c0_11], %14 {strides = array<i32>} : memref<2x8x128xf32, #tpu.memory_space<vmem>>, vector<2x8x128xf32>,
    return
  }
  func.func @transform_0(%arg0: i32) -> i32 {
    %c0_i32 = arith.constant 0 : i32
    %c0_i32_0 = arith.constant 0 : i32
    return %c0_i32 : i32
  }
  func.func @transform_1(%arg0: i32) -> (i32, i32, i32) {
    %c0_i32 = arith.constant 0 : i32
    %c0_i32_0 = arith.constant 0 : i32
    %c0_i32_1 = arith.constant 0 : i32
    return %arg0, %c0_i32, %c0_i32_0 : i32, i32, i32
  }
  func.func @transform_2(%arg0: i32) -> (i32, i32, i32) {
    %c0_i32 = arith.constant 0 : i32
    %c0_i32_0 = arith.constant 0 : i32
    %c0_i32_1 = arith.constant 0 : i32
    return %arg0, %c0_i32, %c0_i32_0 : i32, i32, i32
  }
  func.func @transform_3(%arg0: i32) -> (i32, i32, i32) {
    %c0_i32 = arith.constant 0 : i32
    %c0_i32_0 = arith.constant 0 : i32
    %c0_i32_1 = arith.constant 0 : i32
    return %arg0, %c0_i32, %c0_i32_0 : i32, i32, i32
  }
  func.func @transform_4(%arg0: i32) -> (i32, i32, i32) {
    %c0_i32 = arith.constant 0 : i32
    %c0_i32_0 = arith.constant 0 : i32
    %c0_i32_1 = arith.constant 0 : i32
    return %arg0, %c0_i32, %c0_i32_0 : i32, i32, i32
  }
}

</mosaic_0001>

<bundles_post_ra>
// kernel: soil_evaporation_vae_loss.3
= control target key start
LH: loop header
LB: loop body
LE: loop exit
PB: predicated region body
PF: predicated region fallthrough
CT: control target
= control target key end

     0   :  { %10 = vsyncpa [#allocation3], 0  ;;  %s133_s0 = inlined_call_operand.vmem [shape: f32[4], index: 0, kind: input, shape index: {}]   ;;  %s134_s1 = inlined_call_operand.vmem [shape: f32[2,8,128], index: 1, kind: input, shape index: {}]   ;;  %s135_s2 = inlined_call_operand.vmem [shape: f32[2,8,128], index: 2, kind: input, shape index: {}]   ;;  %s136_s3 = inlined_call_operand.vmem [shape: f32[2,8,128], index: 3, kind: output, shape index: {0}]   ;;  %s137_s4 = inlined_call_operand.vmem [shape: f32[2,8,128], index: 4, kind: output, shape index: {1}]  }
   0x1   :  { %s17_s17 = sshll.u32 %s133_s0, 4  ;;  %s18_s17 = int_to_ptr.vmem [resolvable:$true] %s17_s17 }
   0x2   :  { %s66_s18 = scalar_lea.vmem %s18_s17, 16  ;;  %p71_p1 = scmp.lt.s32.totalorder %s18_s17, %s18_s17 }
   0x3   :  { %p67_p0 = scmp.ne.s32.totalorder %s18_s17, %s66_s18  ;;  %p72_p2 = scmp.lt.s32.totalorder %s66_s18, %s66_s18 }
   0x5   :  { %p73_p3 = por %p72_p2, %p71_p1 }
   0x7   :  { %p74_p4 = pnand %p73_p3, %p67_p0 }
   0x9   :  { %77 = shalt.err (!%p74_p4)
}
   0xa   :  { %s80_s19 = smov [#allocation2]  }
   0xb   :  { %20 = dma.vmem_to_smem %s18_s17, 16, %s80_s19, [#allocation3]  }
   0xc   :  { %78 = dma.done.wait [#allocation3], 16  }
   0xd   :  { %79 = vsyncadd [#allocation3], 4294967280 }
   0xe   :  { %28 = sfence }
   0xf   :  { %s33_s20 = sld [smem:[#allocation2]]  ;;  %v29_v0 = vld [vmem:[%s134_s1] sm:$0xff]  ;;  %v30_v1 = vld [vmem:[%s134_s1 + $0x8] sm:$0xff] }
  0x10   :  { %s62_s21 = sld [smem:[#allocation2 + $0x1]]  ;;  %v31_v3 = vld [vmem:[%s135_s2] sm:$0xff]  ;;  %v32_v7 = vld [vmem:[%s135_s2 + $0x8] sm:$0xff] }
  0x11   :  { %s63_s22 = sld [smem:[#allocation2 + $0x2]] }
  0x12   :  { %s64_s23 = sld [smem:[#allocation2 + $0x3]] }
  0x15   :  { %v34_v2 = vstv %s33_s20 }
  0x16   :  { %v35_v4 = vsub.f32 %v29_v0, %v34_v2  ;;  %v38_v5 = vstv %s62_s21  ;;  %v36_v6 = vsub.f32 %v30_v1, %v34_v2 }
  0x17   :  { %v44_v8 = vstv %s63_s22 }
  0x18   :  { %v39_v9 = vmul.f32 %v38_v5, %v35_v4  ;;  %v40_v10 = vmul.f32 %v38_v5, %v36_v6  ;;  %v45_v11 = vsub.f32 %v31_v3, %v44_v8  ;;  %v48_v12 = vstv %s64_s23 }
  0x19   :  { %v46_v13 = vsub.f32 %v32_v7, %v44_v8 }
  0x1a   :  { %41 = vst [vmem:[%s136_s3] sm:$0xff] %v39_v9  ;;  %42 = vst [vmem:[%s136_s3 + $0x8] sm:$0xff] %v40_v10  ;;  %v49_v14 = vmul.f32 %v48_v12, %v45_v11 }
  0x1b   :  { %v50_v15 = vmul.f32 %v48_v12, %v46_v13 }
  0x1c   :  { %51 = vst [vmem:[%s137_s4] sm:$0xff] %v49_v14 }
  0x1d   :  { %52 = vst [vmem:[%s137_s4 + $0x8] sm:$0xff] %v50_v15 }
  0x1e   :  { %61 = vsyncpa [#allocation3], 1 }

// kernel: soil_evaporation_vae_loss.2
= control target key start
LH: loop header
LB: loop body
LE: loop exit
PB: predicated region body
PF: predicated region fallthrough
CT: control target
= control target key end

     0   :  { %s173_s0 = inlined_call_operand.vmem [shape: f32[2,8,128], index: 0, kind: input, shape index: {}]   ;;  %s174_s1 = inlined_call_operand.vmem [shape: f32[2,8,128], index: 1, kind: input, shape index: {}]   ;;  %s175_s2 = inlined_call_operand.vmem [shape: f32[1,5,8,128], index: 2, kind: output, shape index: {}]  }
   0x1   :  { %v68_v0 = vld [vmem:[%s173_s0] sm:$0xff]  ;;  %v69_v1 = vld [vmem:[%s173_s0 + $0x8] sm:$0xff] }
   0x2   :  { %v70_v2 = vld [vmem:[%s174_s1] sm:$0xff]  ;;  %v75_v3 = vmin.f32 %v68_v0, %v69_v1  ;;  %v80_v4 = vmax.f32 %v68_v0, %v69_v1  ;;  %v71_v5 = vld [vmem:[%s174_s1 + $0x8] sm:$0xff] }
   0x3   :  { %v72_v6 = vsub.f32 %v68_v0, %v70_v2  ;;  %v85_v7 = vmin.f32 %v70_v2, %v71_v5  ;;  %v90_v8 = vmax.f32 %v70_v2, %v71_v5  ;;  %v73_v9 = vsub.f32 %v69_v1, %v71_v5 }
   0x4   :  { %77 = vst [vmem:[%s175_s2] sm:$0xff] %v75_v3  ;;  %121 = vst [vmem:[%s175_s2 + $0x8] sm:$0xff] %v80_v4 }
   0x5   :  { %v95_v10 = vmul.f32 %v72_v6, %v72_v6  ;;  %v96_v11 = vmul.f32 %v73_v9, %v73_v9  ;;  %123 = vst [vmem:[%s175_s2 + $0x10] sm:$0xff] %v85_v7  ;;  %125 = vst [vmem:[%s175_s2 + $0x18] sm:$0xff] %v90_v8 }
   0x7   :  { %v97_v12 = vadd.f32 %v96_v11, %v95_v10 }
   0x9   :  { %127 = vst [vmem:[%s175_s2 + $0x20] sm:$0xff] %v97_v12 }

</bundles_post_ra>
